<compile_context>
chip_gen: v6e
topology: v6e:2x2x1
jax: 0.10.0
libtpu: 0.0.40
codegen_flags: <defaults>
</compile_context>

<pallas_src>
import functools
import math

import jax
import jax.numpy as jnp
import numpy as np
from jax.experimental import pallas as pl
from jax.experimental.pallas import tpu as pltpu


def _round_up(x, m):
    return (x + m - 1) // m * m


def _attention_gnn_kernel(text_ref, adj_ref, wqkv_ref, bqkv_ref,
                          out_ref, new_adj_ref, *, compute_dtype):
    # text_ref: (Bt, N, F_in)   adj_ref: (Bt, N, N)
    # wqkv_ref: (F_in, 3*F_pad) pre-transposed+fused, 1/temp folded into Q cols
    # bqkv_ref: (1, 3*F_pad)
    bt, n, f_in = text_ref.shape
    f_pad = wqkv_ref.shape[1] // 3

    # Fused QKV projection over all Bt*N rows (fills MXU sublanes).
    # MXU operands in compute_dtype (bf16 by default), f32 accumulation.
    x = text_ref[...].astype(compute_dtype).reshape(bt * n, f_in)
    w = wqkv_ref[...].astype(compute_dtype)
    qkv = jnp.dot(x, w, preferred_element_type=jnp.float32) + bqkv_ref[...]

    # f_pad is a multiple of 128 -> lane-aligned slices (no relayout copies).
    q = qkv[:, 0 * f_pad:1 * f_pad].reshape(bt, n, f_pad).astype(compute_dtype)
    k = qkv[:, 1 * f_pad:2 * f_pad].reshape(bt, n, f_pad).astype(compute_dtype)
    v = qkv[:, 2 * f_pad:3 * f_pad].reshape(bt, n, f_pad).astype(compute_dtype)

    # Single hoisted transpose of K, then a plain batched matmul on the MXU.
    k_t = jnp.swapaxes(k, 1, 2)                               # (bt, f_pad, n)
    s = jnp.einsum("bqf,bfk->bqk", q, k_t,
                   preferred_element_type=jnp.float32)        # 1/temp already in q

    # Stable softmax numerator in a single expression (no extra (bt,n,n) slab).
    p = jnp.exp(s - jnp.max(s, axis=-1, keepdims=True))
    denom = jnp.sum(p, axis=-1, keepdims=True)
    inv = pl.reciprocal(denom, approx=True)                   # EUP fast path
    inv = inv * (2.0 - denom * inv)                           # 1 Newton step

    # softmax(s) @ adj == (p @ adj) * inv (inv is per-row): folding the inverse
    # after the matmul removes the explicit `attn` slab and one O(N^2) multiply.
    adj_c = adj_ref[...].astype(compute_dtype)
    new_adj = jnp.einsum("bqk,bkm->bqm", p.astype(compute_dtype), adj_c,
                         preferred_element_type=jnp.float32) * inv
    out = jnp.einsum("bqm,bmf->bqf", new_adj.astype(compute_dtype), v,
                     preferred_element_type=jnp.float32)

    new_adj_ref[...] = new_adj.astype(new_adj_ref.dtype)
    out_ref[...] = out.astype(out_ref.dtype)


def _tpu_caps():
    """Return (physical per-core VMEM bytes, chip has multiple TensorCores)."""
    vmem = 128 << 20
    try:
        vmem = int(getattr(pltpu.get_tpu_info(), "vmem_capacity_bytes", vmem))
    except Exception:
        pass
    multi_tc = False
    try:
        multi_tc = "v7" in jax.devices()[0].device_kind.lower()
    except Exception:
        pass
    # v7x is the generation with 64 MiB/TC; it is also the dual-TC one.
    if vmem <= (64 << 20):
        multi_tc = True
    return vmem, multi_tc


def _vmem_bytes_for_tile(bt, n, f_in, f_pad, text_bytes, adj_bytes, cb):
    """Rough per-grid-step VMEM need: double-buffered I/O + live temporaries."""
    io = 2 * (bt * n * f_in * text_bytes + bt * n * n * adj_bytes      # inputs
              + bt * n * f_pad * 4 + bt * n * n * 4)                   # outputs
    weights = 2 * (f_in * 3 * f_pad * 4 + 3 * f_pad * 4)
    temps = (bt * n * f_in * cb                                        # x cast
             + bt * n * 3 * f_pad * 4 + 4 * bt * n * f_pad * cb        # qkv,q,k,v,k_t
             + 3 * bt * n * n * 4 + 2 * bt * n * n * cb                # s,p,new_adj + casts
             + bt * n * f_pad * 4)                                     # out
    return io + weights + temps


def _choose_batch_tile(B, n, f_in, f_pad, text_bytes, adj_bytes, cb,
                       vmem_budget, multi_tc):
    """Largest divisor of B whose footprint fits the VMEM budget; on dual-TC
    chips (v7x) keep >= 2 grid steps so the "parallel" batch axis feeds both
    TensorCores.  Single-TC chips (v5e/v6e) take the biggest tile that fits."""
    divisors = [d for d in range(1, B + 1) if B % d == 0]
    fitting = [d for d in divisors
               if _vmem_bytes_for_tile(d, n, f_in, f_pad,
                                       text_bytes, adj_bytes, cb) <= vmem_budget]
    bt = max(fitting) if fitting else 1
    if multi_tc and bt > 1 and B // bt < 2:
        smaller = [d for d in fitting if B // d >= 2]
        if smaller:
            bt = max(smaller)
    return bt


def attention_gnn(text, adj, params, *, compute_dtype=jnp.bfloat16):
    """Pallas TPU implementation of AttentionGNN.forward.

    text: (B, N, F_in);  adj: (B, N, N) any numeric dtype (cast like .float()).
    params: dict with wq, bq, wk, bk, wv, bv in PyTorch nn.Linear layout.
    compute_dtype: MXU operand dtype (bf16 default; f32 for exact results).
    Returns (output (B, N, F_out), new_adj (B, N, N)), both float32.
    """
    B, N, F_in = text.shape
    F_out = params["wq"].shape[0]
    inv_temp = 1.0 / math.sqrt(F_in)

    # Lane-dense padding of the projection width: sub-128 last dims cause
    # masked partial stores and lane-sparse MXU tiles.  Zero columns are exact
    # no-ops for the score contraction and give zero output columns.
    F_pad = F_out if F_out % 128 == 0 else _round_up(max(F_out, 128), 128)

    def prep_w(w, scale=1.0):
        wt = (w.T * scale).astype(jnp.float32)                 # (F_in, F_out)
        if F_pad != F_out:
            wt = jnp.pad(wt, ((0, 0), (0, F_pad - F_out)))
        return wt

    def prep_b(b, scale=1.0):
        bb = (b * scale).astype(jnp.float32)
        if F_pad != F_out:
            bb = jnp.pad(bb, (0, F_pad - F_out))
        return bb

    # 1/temperature folded into Q; Q/K/V fused into one weight/bias.
    wqkv = jnp.concatenate([prep_w(params["wq"], inv_temp),
                            prep_w(params["wk"]),
                            prep_w(params["wv"])], axis=1)      # (F_in, 3*F_pad)
    bqkv = jnp.concatenate([prep_b(params["bq"], inv_temp),
                            prep_b(params["bk"]),
                            prep_b(params["bv"])]).reshape(1, 3 * F_pad)

    # adj / new_adj dominate HBM traffic; ship adj in the compute dtype on the
    # bf16 path (exact for 0/1 adjacency, halves the dominant read on v5e).
    adj_in = adj if compute_dtype == jnp.float32 else adj.astype(compute_dtype)

    vmem_phys, multi_tc = _tpu_caps()
    vmem_budget = int(vmem_phys * 0.8)          # headroom; never target full VMEM
    cb = jnp.dtype(compute_dtype).itemsize
    Bt = _choose_batch_tile(B, N, F_in, F_pad, text.dtype.itemsize,
                            adj_in.dtype.itemsize, cb, vmem_budget, multi_tc)
    grid = (B // Bt,)

    vmem_est = _vmem_bytes_for_tile(Bt, N, F_in, F_pad, text.dtype.itemsize,
                                    adj_in.dtype.itemsize, cb)
    vmem_limit = int(min(vmem_budget,
                         max(32 << 20, int(vmem_est * 1.25) + (2 << 20))))

    batch_blk = lambda b: (b, 0, 0)     # this grid step's batch slab
    replicated = lambda b: (0, 0)       # weights shared across the grid

    flops = B * (2 * N * F_in * 3 * F_pad     # fused QKV projection
                 + 2 * N * N * F_pad          # q @ k^T
                 + 2 * N * N * N              # p @ adj
                 + 2 * N * N * F_pad)         # new_adj @ v
    bytes_accessed = (text.size * text.dtype.itemsize
                      + adj_in.size * adj_in.dtype.itemsize
                      + 4 * (wqkv.size + bqkv.size + B * N * F_pad + B * N * N))
    cost = pl.CostEstimate(flops=int(flops), transcendentals=int(B * N * N),
                           bytes_accessed=int(bytes_accessed))

    kernel = functools.partial(_attention_gnn_kernel, compute_dtype=compute_dtype)

    out_pad, new_adj = pl.pallas_call(
        kernel,
        out_shape=(
            jax.ShapeDtypeStruct((B, N, F_pad), jnp.float32),
            jax.ShapeDtypeStruct((B, N, N), jnp.float32),
        ),
        grid_spec=pltpu.PrefetchScalarGridSpec(
            num_scalar_prefetch=0,
            grid=grid,
            in_specs=[
                pl.BlockSpec((Bt, N, F_in), batch_blk),        # text
                # TODO(synk): try pipeline_mode=pl.Buffered(3) here on v5e if
                # the profile shows exposed adj DMA.
                pl.BlockSpec((Bt, N, N), batch_blk),           # adj
                pl.BlockSpec((F_in, 3 * F_pad), replicated),   # fused W_qkv
                pl.BlockSpec((1, 3 * F_pad), replicated),      # fused b_qkv
            ],
            out_specs=[
                pl.BlockSpec((Bt, N, F_pad), batch_blk),       # output (padded)
                pl.BlockSpec((Bt, N, N), batch_blk),           # new_adj
            ],
        ),
        compiler_params=pltpu.CompilerParams(
            dimension_semantics=("parallel",),
            vmem_limit_bytes=vmem_limit),
        cost_estimate=cost,
    )(text, adj_in, wqkv, bqkv)

    out = out_pad if F_pad == F_out else out_pad[:, :, :F_out]
    return out, new_adj


def init_params(key, in_features, out_features):
    """Deterministic init matching nn.Linear shapes (uniform +/- 1/sqrt(in))."""
    ks = jax.random.split(key, 6)
    bound = 1.0 / math.sqrt(in_features)
    u = lambda k, shape: jax.random.uniform(k, shape, jnp.float32, -bound, bound)
    return {
        "wq": u(ks[0], (out_features, in_features)),
        "bq": u(ks[1], (out_features,)),
        "wk": u(ks[2], (out_features, in_features)),
        "bk": u(ks[3], (out_features,)),
        "wv": u(ks[4], (out_features, in_features)),
        "bv": u(ks[5], (out_features,)),
    }


def attention_gnn_ref(text, adj, params):
    """Pure-JAX reference mirroring the PyTorch forward."""
    temperature = math.sqrt(text.shape[-1])
    lin = lambda x, w, b: jnp.einsum("bnf,of->bno", x, w) + b
    q = lin(text, params["wq"], params["bq"])
    k = lin(text, params["wk"], params["bk"])
    v = lin(text, params["wv"], params["bv"])
    scores = jax.nn.softmax(
        jnp.einsum("bno,bmo->bnm", q, k) / temperature, axis=-1)
    new_adj = jnp.einsum("bnm,bmk->bnk", scores, adj.astype(jnp.float32))
    out = jnp.einsum("bnm,bmo->bno", new_adj, v)
    return out, new_adj


if __name__ == "__main__":
    B, N = 2, 8
    in_features, out_features = 16, 32

    key = jax.random.PRNGKey(0)
    k_text, k_adj, k_params = jax.random.split(key, 3)

    text = jax.random.normal(k_text, (B, N, in_features), jnp.float32)
    # adjacency: binary 0/1 matrix (cast to float inside forward, as in PyTorch)
    adj = (jax.random.uniform(k_adj, (B, N, N)) > 0.5).astype(jnp.float32)

    params = init_params(k_params, in_features, out_features)
    out_ref, new_adj_ref = attention_gnn_ref(text, adj, params)

    # 1) Exact path: f32 MXU operands, tight tolerance vs the reference.
    out32, na32 = attention_gnn(text, adj, params, compute_dtype=jnp.float32)
    jax.block_until_ready((out32, na32))
    np.testing.assert_allclose(np.asarray(out32), np.asarray(out_ref),
                               rtol=1e-5, atol=1e-5)
    np.testing.assert_allclose(np.asarray(na32), np.asarray(new_adj_ref),
                               rtol=1e-5, atol=1e-5)

    # 2) Default fast path: bf16 MXU operands with f32 accumulation
    #    (looser tolerance commensurate with bf16 operand rounding).
    out16, na16 = attention_gnn(text, adj, params)
    jax.block_until_ready((out16, na16))
    np.testing.assert_allclose(np.asarray(out16), np.asarray(out_ref),
                               rtol=5e-2, atol=5e-2)
    np.testing.assert_allclose(np.asarray(na16), np.asarray(new_adj_ref),
                               rtol=5e-2, atol=5e-2)

    print("KERNEL_OK")
</pallas_src>

<mosaic_0001>
module attributes {stable_mosaic.version = 11 : i64} {
  func.func @_attention_gnn_kernel(%arg0: i32, %arg1: memref<2x8x16xf32, #tpu.memory_space<vmem>>, %arg2: memref<2x8x8xf32, #tpu.memory_space<vmem>>, %arg3: memref<16x384xf32, #tpu.memory_space<vmem>>, %arg4: memref<1x384xf32, #tpu.memory_space<vmem>>, %arg5: memref<2x8x128xf32, #tpu.memory_space<vmem>>, %arg6: memref<2x8x8xf32, #tpu.memory_space<vmem>>) attributes {dimension_semantics = [#tpu.dimension_semantics<parallel>], iteration_bounds = array<i64: 1>, scalar_prefetch = 0 : i64, scratch_operands = 0 : i64, tpu.core_type = #tpu.core_type<tc>, window_params = [{transform_indices = @transform_0, window_bounds = array<i64: 2, 8, 16>}, {transform_indices = @transform_1, window_bounds = array<i64: 2, 8, 8>}, {pipeline_mode = #tpu.pipeline_mode<synchronous>, transform_indices = @transform_2, window_bounds = array<i64: 16, 384>}, {pipeline_mode = #tpu.pipeline_mode<synchronous>, transform_indices = @transform_3, window_bounds = array<i64: 1, 384>}, {transform_indices = @transform_4, window_bounds = array<i64: 2, 8, 128>}, {transform_indices = @transform_5, window_bounds = array<i64: 2, 8, 8>}]} {
    %c0 = arith.constant 0 : index
    %c0_0 = arith.constant 0 : index
    %c0_1 = arith.constant 0 : index
    %0 = vector.load %arg1[%c0, %c0_0, %c0_1] : memref<2x8x16xf32, #tpu.memory_space<vmem>>, vector<2x8x16xf32>
    %1 = vector.shape_cast %0 : vector<2x8x16xf32> to vector<16x16xf32>
    %c0_2 = arith.constant 0 : index
    %c0_3 = arith.constant 0 : index
    %2 = vector.load %arg3[%c0_2, %c0_3] : memref<16x384xf32, #tpu.memory_space<vmem>>, vector<16x384xf32>
    %cst = arith.constant dense<0.000000e+00> : vector<16x384xf32>
    %3 = tpu.matmul %1, %2, %cst {dimension_numbers = #tpu.dot_dimension_numbers<[1], [0], [0], [1], [0, 0, 1, 1], [], []>} : vector<16x16xf32>, vector<16x384xf32>, vector<16x384xf32> -> vector<16x384xf32>
    %c0_4 = arith.constant 0 : index
    %c0_5 = arith.constant 0 : index
    %4 = vector.load %arg4[%c0_4, %c0_5] : memref<1x384xf32, #tpu.memory_space<vmem>>, vector<1x384xf32>
    %5 = vector.broadcast %4 : vector<1x384xf32> to vector<16x384xf32>
    %6 = arith.addf %3, %5 : vector<16x384xf32>
    %7 = vector.extract_strided_slice %6 {offsets = [0, 0], sizes = [16, 128], strides = [1, 1]} : vector<16x384xf32> to vector<16x128xf32>
    %8 = vector.shape_cast %7 : vector<16x128xf32> to vector<2x8x128xf32>
    %9 = vector.extract_strided_slice %6 {offsets = [0, 128], sizes = [16, 128], strides = [1, 1]} : vector<16x384xf32> to vector<16x128xf32>
    %10 = vector.shape_cast %9 : vector<16x128xf32> to vector<2x8x128xf32>
    %11 = vector.extract_strided_slice %6 {offsets = [0, 256], sizes = [16, 128], strides = [1, 1]} : vector<16x384xf32> to vector<16x128xf32>
    %12 = vector.shape_cast %11 : vector<16x128xf32> to vector<2x8x128xf32>
    %13 = tpu.transpose %10, [0, 2, 1] : vector<2x8x128xf32> -> vector<2x128x8xf32>
    "tpu.trace_start"() <{level = 10 : i32, message = "bqf,bfk->bqk"}> : () -> ()
    %cst_6 = arith.constant dense<0.000000e+00> : vector<2x8x8xf32>
    %14 = tpu.matmul %8, %13, %cst_6 {dimension_numbers = #tpu.dot_dimension_numbers<[2], [1], [1], [2], [0, 0, 0, 1, 1, 2], [0], [0]>} : vector<2x8x128xf32>, vector<2x128x8xf32>, vector<2x8x8xf32> -> vector<2x8x8xf32>
    "tpu.trace_stop"() : () -> ()
    %cst_7 = arith.constant dense<0xFF800000> : vector<2x8xf32>
    %15 = vector.multi_reduction <maximumf>, %14, %cst_7 [2] : vector<2x8x8xf32> to vector<2x8xf32>
    %16 = vector.shape_cast %15 : vector<2x8xf32> to vector<2x8x1xf32>
    %17 = vector.broadcast %16 : vector<2x8x1xf32> to vector<2x8x8xf32>
    %18 = arith.subf %14, %17 : vector<2x8x8xf32>
    %19 = math.exp %18 : vector<2x8x8xf32>
    %cst_8 = arith.constant dense<0.000000e+00> : vector<2x8xf32>
    %20 = vector.multi_reduction <add>, %19, %cst_8 [2] : vector<2x8x8xf32> to vector<2x8xf32>
    %21 = vector.shape_cast %20 : vector<2x8xf32> to vector<2x8x1xf32>
    %22 = tpu.reciprocal %21 {approx = true} : vector<2x8x1xf32> -> vector<2x8x1xf32>
    %23 = arith.mulf %21, %22 : vector<2x8x1xf32>
    %cst_9 = arith.constant 2.000000e+00 : f32
    %24 = vector.broadcast %cst_9 : f32 to vector<2x8x1xf32>
    %25 = arith.subf %24, %23 : vector<2x8x1xf32>
    %26 = arith.mulf %22, %25 : vector<2x8x1xf32>
    %c0_10 = arith.constant 0 : index
    %c0_11 = arith.constant 0 : index
    %c0_12 = arith.constant 0 : index
    %27 = vector.load %arg2[%c0_10, %c0_11, %c0_12] : memref<2x8x8xf32, #tpu.memory_space<vmem>>, vector<2x8x8xf32>
    "tpu.trace_start"() <{level = 10 : i32, message = "bqk,bkm->bqm"}> : () -> ()
    %cst_13 = arith.constant dense<0.000000e+00> : vector<2x8x8xf32>
    %28 = tpu.matmul %19, %27, %cst_13 {dimension_numbers = #tpu.dot_dimension_numbers<[2], [1], [1], [2], [0, 0, 0, 1, 1, 2], [0], [0]>} : vector<2x8x8xf32>, vector<2x8x8xf32>, vector<2x8x8xf32> -> vector<2x8x8xf32>
    "tpu.trace_stop"() : () -> ()
    %29 = vector.broadcast %26 : vector<2x8x1xf32> to vector<2x8x8xf32>
    %30 = arith.mulf %28, %29 : vector<2x8x8xf32>
    "tpu.trace_start"() <{level = 10 : i32, message = "bqm,bmf->bqf"}> : () -> ()
    %cst_14 = arith.constant dense<0.000000e+00> : vector<2x8x128xf32>
    %31 = tpu.matmul %30, %12, %cst_14 {dimension_numbers = #tpu.dot_dimension_numbers<[2], [1], [1], [2], [0, 0, 0, 1, 1, 2], [0], [0]>} : vector<2x8x8xf32>, vector<2x8x128xf32>, vector<2x8x128xf32> -> vector<2x8x128xf32>
    "tpu.trace_stop"() : () -> ()
    %c0_15 = arith.constant 0 : index
    %c0_16 = arith.constant 0 : index
    %c0_17 = arith.constant 0 : index
    %32 = vector.load %arg6[%c0_15, %c0_16, %c0_17] : memref<2x8x8xf32, #tpu.memory_space<vmem>>, vector<2x8x8xf32>
    tpu.vector_store %arg6[%c0_15, %c0_16, %c0_17], %30 {strides = array<i32>} : memref<2x8x8xf32, #tpu.memory_space<vmem>>, vector<2x8x8xf32>,
    %c0_18 = arith.constant 0 : index
    %c0_19 = arith.constant 0 : index
    %c0_20 = arith.constant 0 : index
    %33 = vector.load %arg5[%c0_18, %c0_19, %c0_20] : memref<2x8x128xf32, #tpu.memory_space<vmem>>, vector<2x8x128xf32>
    tpu.vector_store %arg5[%c0_18, %c0_19, %c0_20], %31 {strides = array<i32>} : memref<2x8x128xf32, #tpu.memory_space<vmem>>, vector<2x8x128xf32>,
    return
  }
  func.func @transform_0(%arg0: i32) -> (i32, i32, i32) {
    %c0_i32 = arith.constant 0 : i32
    %c0_i32_0 = arith.constant 0 : i32
    %c0_i32_1 = arith.constant 0 : i32
    return %arg0, %c0_i32, %c0_i32_0 : i32, i32, i32
  }
  func.func @transform_1(%arg0: i32) -> (i32, i32, i32) {
    %c0_i32 = arith.constant 0 : i32
    %c0_i32_0 = arith.constant 0 : i32
    %c0_i32_1 = arith.constant 0 : i32
    return %arg0, %c0_i32, %c0_i32_0 : i32, i32, i32
  }
  func.func @transform_2(%arg0: i32) -> (i32, i32) {
    %c0_i32 = arith.constant 0 : i32
    %c0_i32_0 = arith.constant 0 : i32
    %c0_i32_1 = arith.constant 0 : i32
    return %c0_i32, %c0_i32_0 : i32, i32
  }
  func.func @transform_3(%arg0: i32) -> (i32, i32) {
    %c0_i32 = arith.constant 0 : i32
    %c0_i32_0 = arith.constant 0 : i32
    %c0_i32_1 = arith.constant 0 : i32
    return %c0_i32, %c0_i32_0 : i32, i32
  }
  func.func @transform_4(%arg0: i32) -> (i32, i32, i32) {
    %c0_i32 = arith.constant 0 : i32
    %c0_i32_0 = arith.constant 0 : i32
    %c0_i32_1 = arith.constant 0 : i32
    return %arg0, %c0_i32, %c0_i32_0 : i32, i32, i32
  }
  func.func @transform_5(%arg0: i32) -> (i32, i32, i32) {
    %c0_i32 = arith.constant 0 : i32
    %c0_i32_0 = arith.constant 0 : i32
    %c0_i32_1 = arith.constant 0 : i32
    return %arg0, %c0_i32, %c0_i32_0 : i32, i32, i32
  }
}

</mosaic_0001>

<bundles_post_ra>
// kernel: tpu_custom_call.1
= control target key start
LH: loop header
LB: loop body
LE: loop exit
PB: predicated region body
PF: predicated region fallthrough
CT: control target
= control target key end

     0   :  { %11 = vsyncpa [#allocation3], 0  ;;  %s1040_s0 = inlined_call_operand.hbm [shape: f32[2,8,16], index: 0, kind: input, shape index: {}]   ;;  %s1041_s1 = inlined_call_operand.hbm [shape: f32[2,8,8], index: 1, kind: input, shape index: {}]   ;;  %s1042_s2 = inlined_call_operand.hbm [shape: f32[16,384], index: 2, kind: input, shape index: {}]   ;;  %s1043_s3 = inlined_call_operand.vmem [shape: f32[1,384], index: 3, kind: input, shape index: {}]   ;;  %s1044_s4 = inlined_call_operand.hbm [shape: f32[2,8,128], index: 4, kind: output, shape index: {0}]   ;;  %s1045_s5 = inlined_call_operand.hbm [shape: f32[2,8,8], index: 5, kind: output, shape index: {1}]  }
   0x1   :  { %12 = vsyncpa [#allocation6], 0 }
   0x2   :  { %13 = vsyncpa [#allocation4], 0 }
   0x3   :  { %14 = vsyncpa [#allocation10], 0  ;;  %s935_s18 = smov [#allocation5]   ;;  %s936_s20 = smov [#allocation2]  }
   0x4   :  { %s32_s19 = sshll.u32 %s935_s18, 4  ;;  %s20_s21 = sshll.u32 %s936_s20, 4  ;;  %s33_s19 = int_to_ptr.vmem [resolvable:$true] %s32_s19  ;;  %s21_s21 = int_to_ptr.vmem [resolvable:$true] %s20_s21 }
   0x5   :  { %s835_s22 = scalar_lea.vmem %s33_s19, 256  ;;  %p840_p1 = scmp.lt.s32.totalorder %s33_s19, %s33_s19 }
   0x6   :  { %p836_p0 = scmp.ne.s32.totalorder %s33_s19, %s835_s22  ;;  %p841_p2 = scmp.lt.s32.totalorder %s835_s22, %s835_s22 }
   0x8   :  { %p842_p3 = por %p841_p2, %p840_p1 }
   0xa   :  { %p843_p4 = pnand %p842_p3, %p836_p0 }
   0xc   :  { %846 = shalt.err (!%p843_p4)
}
   0xd   :  { %s937_s23 = smov 128   ;;  %s938_s24 = smov 8  }
   0xe   :  { %38 = dma.hbm_to_vmem [thread:$0]  %s1041_s1, 256, %s33_s19, [#allocation6], %s937_s23, %s937_s23, %s938_s24  }
   0xf   :  { %s855_s27 = scalar_lea.vmem %s21_s21, 256  ;;  %p860_p6 = scmp.lt.s32.totalorder %s21_s21, %s21_s21 }
  0x10   :  { %p856_p5 = scmp.ne.s32.totalorder %s21_s21, %s855_s27  ;;  %p861_p7 = scmp.lt.s32.totalorder %s855_s27, %s855_s27 }
  0x12   :  { %p862_p8 = por %p861_p7, %p860_p6 }
  0x14   :  { %p863_p9 = pnand %p862_p8, %p856_p5 }
  0x16   :  { %866 = shalt.err (!%p863_p9)
}
  0x17   :  { %26 = dma.hbm_to_vmem [thread:$0]  %s1040_s0, 256, %s21_s21, [#allocation3], %s937_s23, %s937_s23, %s938_s24  }
  0x18   :  { %s939_s30 = smov [#allocation7]  }
  0x19   :  { %s44_s6 = sshll.u32 %s939_s30, 4  ;;  %s45_s6 = int_to_ptr.vmem [resolvable:$true] %s44_s6 }
  0x1a   :  { %s875_s7 = scalar_lea.vmem %s45_s6, 768  ;;  %p880_p11 = scmp.lt.s32.totalorder %s45_s6, %s45_s6 }
  0x1b   :  { %p876_p10 = scmp.ne.s32.totalorder %s45_s6, %s875_s7  ;;  %p881_p12 = scmp.lt.s32.totalorder %s875_s7, %s875_s7 }
  0x1d   :  { %p882_p13 = por %p881_p12, %p880_p11 }
  0x1f   :  { %p883_p0 = pnand %p882_p13, %p876_p10 }
  0x21   :  { %886 = shalt.err (!%p883_p0)
}
  0x22   :  { %s940_s1 = smov 384   ;;  %s941_s8 = smov 24  }
  0x23   :  { %50 = dma.hbm_to_vmem [thread:$0]  %s1042_s2, 768, %s45_s6, [#allocation6], %s940_s1, %s940_s1, %s941_s8  }
  0x24   :  { %927 = dma.done.wait [#allocation3], 256  }
  0x25   :  { %928 = vsyncadd [#allocation3], 4294967040 }
  0x26   :  { %929 = dma.done.wait [#allocation6], 1024  }
  0x27   :  { %930 = vsyncadd [#allocation6], 4294966272  ;;  %v942_v0 = vmov 0.0   ;;  %v68_v1 = vld [vmem:[#allocation7 + $0x20] sm:$0xff]  ;;  %v67_v2 = vld [vmem:[#allocation7 + $0x18] sm:$0xff]  ;;  %vm87_vm0 = vcmask 130048   ;;  %v72_v9 = vlaneseq }
  0x28   :  { %158 = vmatprep.mubr.f32.mxu0 %v942_v0  ;;  %v65_v3 = vld [vmem:[#allocation7 + $0x8] sm:$0xff]  ;;  %122 = vmatprep.subr.mxu0 %v68_v1  ;;  %v64_v4 = vld [vmem:[#allocation7] sm:$0xff]  ;;  %v66_v8 = vld [vmem:[#allocation7 + $0x10] sm:$0xff]  ;;  %vm943_vm1 = vmmov 0   ;;  %vm386_vm2 = vcmask 64512  }
  0x29   :  { %v62_v5 = vld [vmem:[#allocation2] sm:$0xff]  ;;  %123 = vmatpush1.msra.mxu0 %v67_v2  ;;  %v63_v6 = vld [vmem:[#allocation2 + $0x8] sm:$0xff]  ;;  %v73_v10 = vshrl.u32 %v72_v9, 7  ;;  %v413_v32 = vld [vmem:[#allocation5] sm:$0xff] }
  0x2a   :  { %775 = vmatprep.mubr.msk.f32.mxu1 %vm87_vm0, %v62_v5  ;;  %124 = vmatprep.subr.mxu0 %v65_v3  ;;  %v69_v7 = vld [vmem:[#allocation7 + $0x28] sm:$0xff]  ;;  %v70_v12 = vld [vmem:[%s1043_s3] sm:$0x7]  ;;  %v414_v33 = vld [vmem:[#allocation5 + $0x8] sm:$0xff]  ;;  %s944_s3 = smov [#allocation9]  }
  0x2b   :  { %125 = vmatpush1.msra.mxu0 %v64_v4  ;;  %771 = vmatprep.subr.mxu1 %v69_v7  ;;  %v78_v11 = vsub.s32 1, %v73_v10  ;;  %v74_v13 = vsub.s32 0, %v73_v10  ;;  %v82_v40 = vsub.s32 2, %v73_v10  ;;  %s730_s11 = sshll.u32 %s944_s3, 4  ;;  %s731_s11 = int_to_ptr.vmem [resolvable:$true] %s730_s11 }
  0x2c   :  { %747 = vmatmul.mubr.msk.f32.vlgmr.msra.gmra.mxu0 %vm87_vm0, %v62_v5  ;;  %783 = vmatprep.subr.mxu0 %v942_v0  ;;  %s887_s12 = scalar_lea.vmem %s731_s11, 256  ;;  %p892_p2 = scmp.lt.s32.totalorder %s731_s11, %s731_s11 }
  0x2d   :  { %164 = vmatprep.mubr.f32.mxu0 %v942_v0  ;;  %772 = vmatpush3.msra.mxu1 %v69_v7  ;;  %v79_v14 = vrot.slane %v70_v12, %v78_v11  ;;  %v75_v16 = vrot.slane %v70_v12, %v74_v13  ;;  %v83_v41 = vrot.slane %v70_v12, %v82_v40  ;;  %p888_p1 = scmp.ne.s32.totalorder %s731_s11, %s887_s12  ;;  %p893_p3 = scmp.lt.s32.totalorder %s887_s12, %s887_s12 }
  0x2e   :  { %773 = vmatprep.subr.mxu1 %v66_v8 }
  0x2f   :  { %774 = vmatpush3.msra.mxu1 %v66_v8  ;;  %p894_p4 = por %p893_p3, %p892_p2 }
  0x30   :  { %748 = vmatmul.mubr.msk.f32.gmra.mxu0 %vm87_vm0, %v63_v6  ;;  %776 = vmatmul.mubr.msk.f32.vlgmr.msra.gmra.mxu1 %vm87_vm0, %v63_v6 }
  0x31   :  { %778 = vmatprep.subr.mxu1 %v942_v0  ;;  %780 = vmatprep.mubr.msk.f32.mxu1 %vm943_vm1, %v942_v0  ;;  %p895_p5 = pnand %p894_p4, %p888_p1 }
  0x32   :  { %785 = vmatprep.mubr.msk.f32.mxu0 %vm943_vm1, %v942_v0 }
  0xec   :  { %v160_v15 = vpop.f32.mrf.mxu0 }
  0xed   :  { %v161_v20 = vadd.f32 %v160_v15, %v75_v16 }
  0xee   :  { %v162_v17 = vpop.f32.mrf.mxu0 }
  0xef   :  { %v163_v18 = vadd.f32 %v162_v17, %v79_v14 }
  0xf0   :  { %v166_v19 = vpop.f32.mrf.mxu0  ;;  %v777_v24 = vpop.f32.mrf.mxu1 }
  0xf1   :  { %779 = vmatpush3.xpose.msra.mxu1 %v163_v18  ;;  %v167_v23 = vadd.f32 %v166_v19, %v75_v16  ;;  %v243_v46 = vadd.f32 %v777_v24, %v83_v41 }
  0xf2   :  { %v168_v21 = vpop.f32.mrf.mxu0  ;;  %788 = vmatprep.subr.mxu1 %v942_v0  ;;  %v237_v25 = vpop.f32.mrf.mxu1 }
  0xf3   :  { %v169_v22 = vadd.f32 %v168_v21, %v79_v14  ;;  %v238_v43 = vadd.f32 %v237_v25, %v83_v41 }
  0xf4   :  { %781 = vmatmul.mubr.f32.vlgmr.msra.gmra.mxu1 %v161_v20 }
  0xf5   :  { %784 = vmatpush3.xpose.msra.mxu0 %v169_v22  ;;  %790 = vmatprep.mubr.msk.f32.mxu1 %vm943_vm1, %v942_v0 }
  0xf6   :  { %793 = vmatprep.subr.mxu0 %v942_v0  ;;  %789 = vmatpush3.msra.mxu1 %v413_v32 }
  0xf7   :  { %798 = vmatprep.subr.mxu1 %v942_v0 }
  0xf8   :  { %786 = vmatmul.mubr.f32.vlgmr.msra.gmra.mxu0 %v167_v23 }
  0xf9   :  { %795 = vmatprep.mubr.msk.f32.mxu0 %vm943_vm1, %v942_v0  ;;  %794 = vmatpush3.msra.mxu0 %v414_v33 }
  0xfa   :  { %803 = vmatprep.subr.mxu0 %v942_v0 }
 0x1b4   :  { %v312_v26 = vpop.f32.mrf.mxu1 }
 0x1b5   :  { %v387_v27 = vsel %vm386_vm2, %v312_v26, -inf }
 0x1b6   :  { %388 = vmax.xlane.f32.xlu0 %v387_v27  ;;  %v782_v28 = vpop.f32.mrf.mxu1 }
 0x1b8   :  { %v382_v29 = vpop.f32.mrf.mxu0 }
 0x1b9   :  { %v390_v30 = vsel %vm386_vm2, %v382_v29, -inf }
 0x1ba   :  { %v787_v31 = vpop.f32.mrf.mxu0  ;;  %391 = vmax.xlane.f32.xlu0 %v390_v30 }
 0x23f   :  { %v389_v34 = vpop.xlane.xlu0 %388 }
 0x240   :  { %v393_v35 = vsub.f32 %v312_v26, %v389_v34 }
 0x242   :  { %v395_v36 = vmul.f32 1.442695, %v393_v35 }
 0x243   :  { %v392_v37 = vpop.xlane.xlu0 %391 }
 0x244   :  { %819 = vpow2.f32 %v395_v36  ;;  %v394_v38 = vsub.f32 %v382_v29, %v392_v37 }
 0x246   :  { %v397_v39 = vmul.f32 1.442695, %v394_v38 }
 0x248   :  { %821 = vpow2.f32 %v397_v39 }
 0x251   :  { %v820_v42 = vpop.eup %819 }
 0x252   :  { %791 = vmatmul.mubr.msk.f32.vlgmr.msra.gmra.mxu1 %vm386_vm2, %v820_v42  ;;  %v399_v44 = vsel %vm386_vm2, %v820_v42, 0.0 }
 0x253   :  { %799 = vmatpush3.msra.mxu1 %v238_v43  ;;  %400 = vadd.xlane.f32.xlu1 %v399_v44 }
 0x254   :  { %800 = vmatprep.mubr.msk.f32.mxu1 %vm943_vm1, %v942_v0 }
 0x255   :  { %v822_v45 = vpop.eup %821 }
 0x256   :  { %796 = vmatmul.mubr.msk.f32.vlgmr.msra.gmra.mxu0 %vm386_vm2, %v822_v45  ;;  %v402_v47 = vsel %vm386_vm2, %v822_v45, 0.0 }
 0x257   :  { %804 = vmatpush3.msra.mxu0 %v243_v46  ;;  %403 = vadd.xlane.f32.xlu1 %v402_v47 }
 0x258   :  { %805 = vmatprep.mubr.msk.f32.mxu0 %vm943_vm1, %v942_v0 }
 0x2dc   :  { %v401_v48 = vpop.xlane.xlu1 %400 }
 0x2dd   :  { %823 = vrcp.f32 %v401_v48 }
 0x2e0   :  { %v404_v49 = vpop.xlane.xlu1 %403 }
 0x2e1   :  { %825 = vrcp.f32 %v404_v49 }
 0x2ea   :  { %v824_v50 = vpop.eup %823 }
 0x2eb   :  { %v407_v51 = vmul.f32 %v824_v50, %v401_v48 }
 0x2ed   :  { %v409_v53 = vsub.f32 2.0, %v407_v51 }
 0x2ee   :  { %v826_v52 = vpop.eup %825 }
 0x2ef   :  { %v408_v54 = vmul.f32 %v826_v52, %v404_v49  ;;  %v411_v56 = vmul.f32 %v824_v50, %v409_v53 }
 0x2f1   :  { %v410_v55 = vsub.f32 2.0, %v408_v54 }
 0x2f3   :  { %v412_v60 = vmul.f32 %v826_v52, %v410_v55 }
 0x312   :  { %v484_v57 = vpop.f32.mrf.mxu1 }
 0x313   :  { %v561_v58 = vmul.f32 %v484_v57, %v411_v56 }
 0x314   :  { %v792_v59 = vpop.f32.mrf.mxu1 }
 0x315   :  { %709 = vst.msk [vmem:[#allocation9] sm:$0xff] %vm386_vm2, %v561_v58  ;;  %801 = vmatmul.mubr.msk.f32.vlgmr.msra.gmra.mxu1 %vm386_vm2, %v561_v58 }
 0x316   :  { %v557_v61 = vpop.f32.mrf.mxu0 }
 0x317   :  { %v562_v62 = vmul.f32 %v557_v61, %v412_v60 }
 0x318   :  { %v797_v63 = vpop.f32.mrf.mxu0 }
 0x319   :  { %710 = vst.msk [vmem:[#allocation9 + $0x8] sm:$0xff] %vm386_vm2, %v562_v62  ;;  %806 = vmatmul.mubr.msk.f32.vlgmr.msra.gmra.mxu0 %vm386_vm2, %v562_v62 }
 0x31a   :  { %898 = shalt.err (!%p895_p5)
}
 0x31b   :  { %736 = dma.vmem_to_hbm [thread:$0]  %s731_s11, 256, %s1045_s5, [#allocation10], %s937_s23, %s937_s23, %s938_s24  }
 0x31c   :  { %s945_s15 = smov [#allocation8]  }
 0x31d   :  { %s718_s16 = sshll.u32 %s945_s15, 4  ;;  %s719_s16 = int_to_ptr.vmem [resolvable:$true] %s718_s16 }
 0x31e   :  { %s907_s17 = scalar_lea.vmem %s719_s16, 256  ;;  %p912_p7 = scmp.lt.s32.totalorder %s719_s16, %s719_s16 }
 0x31f   :  { %p908_p6 = scmp.ne.s32.totalorder %s719_s16, %s907_s17  ;;  %p913_p8 = scmp.lt.s32.totalorder %s907_s17, %s907_s17 }
 0x321   :  { %p914_p9 = por %p913_p8, %p912_p7 }
 0x323   :  { %p915_p10 = pnand %p914_p9, %p908_p6 }
 0x3d5   :  { %v632_v0 = vpop.f32.mrf.mxu1 }
 0x3d6   :  { %711 = vst [vmem:[#allocation8] sm:$0xff] %v632_v0 }
 0x3d7   :  { %v802_v1 = vpop.f32.mrf.mxu1 }
 0x3d9   :  { %v705_v2 = vpop.f32.mrf.mxu0 }
 0x3da   :  { %712 = vst [vmem:[#allocation8 + $0x8] sm:$0xff] %v705_v2 }
 0x3db   :  { %v807_v3 = vpop.f32.mrf.mxu0 }
 0x3dc   :  { %918 = shalt.err (!%p915_p10)
}
 0x3dd   :  { %724 = dma.vmem_to_hbm [thread:$0]  %s719_s16, 256, %s1044_s4, [#allocation4], %s937_s23, %s937_s23, %s938_s24  }
 0x3de   :  { %931 = dma.done.wait [#allocation4], 256  }
 0x3df   :  { %932 = vsyncadd [#allocation4], 4294967040 }
 0x3e0   :  { %933 = dma.done.wait [#allocation10], 256  }
 0x3e1   :  { %934 = vsyncadd [#allocation10], 4294967040 }
 0x3e2   :  { %743 = vsyncpa [#allocation3], 1 }
 0x3e3   :  { %744 = vsyncpa [#allocation6], 1 }
 0x3e4   :  { %745 = vsyncpa [#allocation4], 1 }
 0x3e5   :  { %746 = vsyncpa [#allocation10], 1 }

</bundles_post_ra>
